<compile_context>
chip_gen: v7x
topology: tpu7x:2x2x1
jax: 0.10.0
libtpu: 0.0.40
codegen_flags: <defaults>
</compile_context>

<pallas_src>
import functools

import jax
import jax.numpy as jnp
from jax.experimental import pallas as pl
from jax.experimental.pallas import tpu as pltpu


def _round_up(x: int, m: int) -> int:
    return ((x + m - 1) // m) * m


def _ae_layer_kernel(x_ref, w_enc_ref, b_enc_ref, w_dec_ref, b_dec_ref, out_ref,
                     *, enc_act: bool, dec_act: bool, compute_dtype):
    # encoder linear: [bm, n_vis_p] @ [n_vis_p, n_hid_p] + [1, n_hid_p]  (f32 accum)
    h = jnp.dot(x_ref[...], w_enc_ref[...],
                preferred_element_type=jnp.float32) + b_enc_ref[...]
    if enc_act:
        h = jnp.maximum(h, 0.0)  # ReLU
    # Cast the intermediate to the (possibly low-precision) compute dtype so the
    # decoder matmul runs at full MXU throughput; accumulation stays f32.
    h = h.astype(compute_dtype)
    # decoder linear: [bm, n_hid_p] @ [n_hid_p, n_vis_p] + [1, n_vis_p]  (f32 accum)
    y = jnp.dot(h, w_dec_ref[...],
                preferred_element_type=jnp.float32) + b_dec_ref[...]
    if dec_act:
        y = jnp.maximum(y, 0.0)  # ReLU
    out_ref[...] = y.astype(out_ref.dtype)


def ae_layer_forward(x, w_enc, b_enc, w_dec, b_dec, *,
                     layer_type: str = "Latent",
                     block_m: int = 256,
                     compute_dtype=None,
                     vmem_budget_bytes: int = 44 * 1024 * 1024):
    """Pallas forward of AE_layer.

    x:      [B, n_vis]
    w_enc:  [n_vis, n_hid]   (== torch Linear(n_vis, n_hid).weight transposed)
    b_enc:  [n_hid]
    w_dec:  [n_hid, n_vis]   (== torch Linear(n_hid, n_vis).weight transposed)
    b_dec:  [n_vis]
    compute_dtype: optional lower-precision dtype (e.g. jnp.bfloat16) for the
                   matmul operands; accumulation is always f32.
    """
    B, n_vis = x.shape
    assert w_enc.shape[0] == n_vis
    n_hid = w_enc.shape[1]
    assert w_dec.shape == (n_hid, n_vis)
    assert b_enc.shape == (n_hid,) and b_dec.shape == (n_vis,)

    enc_act = layer_type in ("First", "Latent")
    dec_act = layer_type in ("Last", "Latent")

    out_dtype = x.dtype
    cdt = jnp.dtype(compute_dtype) if compute_dtype is not None else jnp.dtype(x.dtype)

    # --- layout padding: features to multiples of 128 (lane-dense output -> unmasked
    #     stores; full MXU lane occupancy on the contraction / output dims).
    n_vis_p = _round_up(n_vis, 128)
    n_hid_p = _round_up(n_hid, 128)

    # --- batch tile: as large as possible (feeds the MXU, amortizes ~0.35us/step
    #     grid overhead) while fitting a v7x-safe VMEM budget.
    bm = _round_up(max(8, min(block_m, B)), 8)
    w_bytes = (n_vis_p * n_hid_p + n_hid_p * n_vis_p) * cdt.itemsize   # weights, single-buffered
    bias_bytes = 2 * 2 * (n_hid_p + n_vis_p) * 4                        # biases (f32), generous

    def _tile_bytes(m):
        return (2 * m * n_vis_p * cdt.itemsize            # x tile, double-buffered
                + 2 * m * n_vis_p * out_dtype.itemsize    # out tile, double-buffered
                + m * n_hid_p * 4                         # h temporary (f32)
                + m * n_vis_p * 4)                        # y temporary (f32)

    while bm > 8 and w_bytes + bias_bytes + _tile_bytes(bm) > vmem_budget_bytes:
        bm = max(8, _round_up(bm // 2, 8))
    # TODO(synk): if the full weights alone exceed the VMEM budget (very large
    # n_vis*n_hid), add a second grid axis tiling w_dec/b_dec/out along n_vis and
    # cache the encoder output in a VMEM scratch computed only at column tile 0.

    grid_m = pl.cdiv(B, bm)      # ragged batch handled by padding, not an assert
    B_p = grid_m * bm

    # --- wrapper-side zero padding (mathematically neutral: padded features/rows
    #     contribute 0 and are sliced away from the output).
    x_p = jnp.zeros((B_p, n_vis_p), cdt).at[:B, :n_vis].set(x.astype(cdt))
    w_enc_p = jnp.zeros((n_vis_p, n_hid_p), cdt).at[:n_vis, :n_hid].set(w_enc.astype(cdt))
    w_dec_p = jnp.zeros((n_hid_p, n_vis_p), cdt).at[:n_hid, :n_vis].set(w_dec.astype(cdt))
    b_enc_p = jnp.zeros((1, n_hid_p), jnp.float32).at[0, :n_hid].set(b_enc.astype(jnp.float32))
    b_dec_p = jnp.zeros((1, n_vis_p), jnp.float32).at[0, :n_vis].set(b_dec.astype(jnp.float32))

    flops = 4 * B_p * n_vis_p * n_hid_p  # two matmuls, 2*M*N*K each
    bytes_accessed = (x_p.size * x_p.dtype.itemsize
                      + w_enc_p.size * w_enc_p.dtype.itemsize
                      + w_dec_p.size * w_dec_p.dtype.itemsize
                      + (b_enc_p.size + b_dec_p.size) * 4
                      + B_p * n_vis_p * out_dtype.itemsize)
    cost = pl.CostEstimate(flops=int(flops), transcendentals=0,
                           bytes_accessed=int(bytes_accessed))

    kernel = functools.partial(_ae_layer_kernel, enc_act=enc_act, dec_act=dec_act,
                               compute_dtype=cdt)

    def _build(single_buffer_weights: bool):
        # Grid-invariant operands (constant index_map) only need one buffer;
        # double-buffering them would just double the resident weight VMEM.
        kw = dict(pipeline_mode=pl.Buffered(1)) if single_buffer_weights else {}
        grid_spec = pltpu.PrefetchScalarGridSpec(
            num_scalar_prefetch=0,
            grid=(grid_m,),
            in_specs=[
                pl.BlockSpec((bm, n_vis_p), lambda i: (i, 0)),               # x tile
                pl.BlockSpec((n_vis_p, n_hid_p), lambda i: (0, 0), **kw),    # encoder weight
                pl.BlockSpec((1, n_hid_p), lambda i: (0, 0), **kw),          # encoder bias
                pl.BlockSpec((n_hid_p, n_vis_p), lambda i: (0, 0), **kw),    # decoder weight
                pl.BlockSpec((1, n_vis_p), lambda i: (0, 0), **kw),          # decoder bias
            ],
            out_specs=pl.BlockSpec((bm, n_vis_p), lambda i: (i, 0)),
        )
        return pl.pallas_call(
            kernel,
            out_shape=jax.ShapeDtypeStruct((B_p, n_vis_p), out_dtype),
            grid_spec=grid_spec,
            compiler_params=pltpu.CompilerParams(
                dimension_semantics=("parallel",),      # batch tiles split across TCs (v7x)
                vmem_limit_bytes=64 * 1024 * 1024),
            cost_estimate=cost,
        )

    try:
        out_p = _build(True)(x_p, w_enc_p, b_enc_p, w_dec_p, b_dec_p)
    except Exception:
        # Fallback for environments where pipeline_mode=pl.Buffered(1) is not
        # supported on this path; correctness identical, just extra weight VMEM.
        out_p = _build(False)(x_p, w_enc_p, b_enc_p, w_dec_p, b_dec_p)

    return out_p[:B, :n_vis]


def ae_layer_reference(x, w_enc, b_enc, w_dec, b_dec, *, layer_type="Latent"):
    h = x @ w_enc + b_enc
    if layer_type in ("First", "Latent"):
        h = jnp.maximum(h, 0.0)
    y = h @ w_dec + b_dec
    if layer_type in ("Last", "Latent"):
        y = jnp.maximum(y, 0.0)
    return y


if __name__ == "__main__":
    # Small shapes consistent with the module's fully-connected forward.
    B, n_vis, n_hid = 16, 64, 32
    layer_type = "Latent"   # both encoder & decoder ReLU active

    key = jax.random.PRNGKey(0)
    k_x, k_we, k_be, k_wd = jax.random.split(key, 4)

    x = jax.random.normal(k_x, (B, n_vis), dtype=jnp.float32)

    # Encoder Linear(n_vis, n_hid): PyTorch default init ~ U(-1/sqrt(n_vis), 1/sqrt(n_vis)).
    bound_e = 1.0 / jnp.sqrt(jnp.float32(n_vis))
    w_enc = jax.random.uniform(k_we, (n_vis, n_hid), minval=-bound_e, maxval=bound_e,
                               dtype=jnp.float32)
    b_enc = jax.random.uniform(k_be, (n_hid,), minval=-bound_e, maxval=bound_e,
                               dtype=jnp.float32)

    # Decoder Linear(n_hid, n_vis): xavier_uniform_ weight, zero bias (per module __init__).
    bound_d = jnp.sqrt(6.0 / jnp.float32(n_hid + n_vis))
    w_dec = jax.random.uniform(k_wd, (n_hid, n_vis), minval=-bound_d, maxval=bound_d,
                               dtype=jnp.float32)
    b_dec = jnp.zeros((n_vis,), dtype=jnp.float32)

    ref = ae_layer_reference(x, w_enc, b_enc, w_dec, b_dec, layer_type=layer_type)

    # f32 compute path: exact vs reference.
    out = ae_layer_forward(x, w_enc, b_enc, w_dec, b_dec, layer_type=layer_type)
    out = jax.block_until_ready(out)
    assert out.shape == (B, n_vis)
    assert jnp.allclose(out, ref, atol=1e-5, rtol=1e-5), "f32 mismatch vs reference"

    # bf16 compute path (throughput / VMEM optimized): looser tolerance by design.
    out_bf16 = ae_layer_forward(x, w_enc, b_enc, w_dec, b_dec, layer_type=layer_type,
                                compute_dtype=jnp.bfloat16)
    out_bf16 = jax.block_until_ready(out_bf16)
    assert out_bf16.shape == (B, n_vis)
    assert jnp.allclose(out_bf16, ref, atol=5e-2, rtol=5e-2), "bf16 mismatch vs reference"

    print("KERNEL_OK")
</pallas_src>

<mosaic_0001>
module attributes {stable_mosaic.version = 11 : i64} {
  func.func @_ae_layer_kernel(%arg0: i32, %arg1: memref<16x128xf32, #tpu.memory_space<vmem>>, %arg2: memref<128x128xf32, #tpu.memory_space<vmem>>, %arg3: memref<1x128xf32, #tpu.memory_space<vmem>>, %arg4: memref<128x128xf32, #tpu.memory_space<vmem>>, %arg5: memref<1x128xf32, #tpu.memory_space<vmem>>, %arg6: memref<16x128xf32, #tpu.memory_space<vmem>>) attributes {dimension_semantics = [#tpu.dimension_semantics<parallel>], iteration_bounds = array<i64: 1>, scalar_prefetch = 0 : i64, scratch_operands = 0 : i64, tpu.core_type = #tpu.core_type<tc>, window_params = [{transform_indices = @transform_0, window_bounds = array<i64: 16, 128>}, {pipeline_mode = #tpu.pipeline_mode<synchronous>, transform_indices = @transform_1, window_bounds = array<i64: 128, 128>}, {pipeline_mode = #tpu.pipeline_mode<synchronous>, transform_indices = @transform_2, window_bounds = array<i64: 1, 128>}, {pipeline_mode = #tpu.pipeline_mode<synchronous>, transform_indices = @transform_3, window_bounds = array<i64: 128, 128>}, {pipeline_mode = #tpu.pipeline_mode<synchronous>, transform_indices = @transform_4, window_bounds = array<i64: 1, 128>}, {transform_indices = @transform_5, window_bounds = array<i64: 16, 128>}]} {
    %c0 = arith.constant 0 : index
    %c0_0 = arith.constant 0 : index
    %0 = vector.load %arg1[%c0, %c0_0] : memref<16x128xf32, #tpu.memory_space<vmem>>, vector<16x128xf32>
    %c0_1 = arith.constant 0 : index
    %c0_2 = arith.constant 0 : index
    %1 = vector.load %arg2[%c0_1, %c0_2] : memref<128x128xf32, #tpu.memory_space<vmem>>, vector<128x128xf32>
    %cst = arith.constant dense<0.000000e+00> : vector<16x128xf32>
    %2 = tpu.matmul %0, %1, %cst {dimension_numbers = #tpu.dot_dimension_numbers<[1], [0], [0], [1], [0, 0, 1, 1], [], []>} : vector<16x128xf32>, vector<128x128xf32>, vector<16x128xf32> -> vector<16x128xf32>
    %c0_3 = arith.constant 0 : index
    %c0_4 = arith.constant 0 : index
    %3 = vector.load %arg3[%c0_3, %c0_4] : memref<1x128xf32, #tpu.memory_space<vmem>>, vector<1x128xf32>
    %4 = vector.broadcast %3 : vector<1x128xf32> to vector<16x128xf32>
    %5 = arith.addf %2, %4 : vector<16x128xf32>
    %cst_5 = arith.constant 0.000000e+00 : f32
    %6 = vector.broadcast %cst_5 : f32 to vector<16x128xf32>
    %7 = arith.maximumf %5, %6 : vector<16x128xf32>
    %c0_6 = arith.constant 0 : index
    %c0_7 = arith.constant 0 : index
    %8 = vector.load %arg4[%c0_6, %c0_7] : memref<128x128xf32, #tpu.memory_space<vmem>>, vector<128x128xf32>
    %cst_8 = arith.constant dense<0.000000e+00> : vector<16x128xf32>
    %9 = tpu.matmul %7, %8, %cst_8 {dimension_numbers = #tpu.dot_dimension_numbers<[1], [0], [0], [1], [0, 0, 1, 1], [], []>} : vector<16x128xf32>, vector<128x128xf32>, vector<16x128xf32> -> vector<16x128xf32>
    %c0_9 = arith.constant 0 : index
    %c0_10 = arith.constant 0 : index
    %10 = vector.load %arg5[%c0_9, %c0_10] : memref<1x128xf32, #tpu.memory_space<vmem>>, vector<1x128xf32>
    %11 = vector.broadcast %10 : vector<1x128xf32> to vector<16x128xf32>
    %12 = arith.addf %9, %11 : vector<16x128xf32>
    %cst_11 = arith.constant 0.000000e+00 : f32
    %13 = vector.broadcast %cst_11 : f32 to vector<16x128xf32>
    %14 = arith.maximumf %12, %13 : vector<16x128xf32>
    %c0_12 = arith.constant 0 : index
    %c0_13 = arith.constant 0 : index
    %15 = vector.load %arg6[%c0_12, %c0_13] : memref<16x128xf32, #tpu.memory_space<vmem>>, vector<16x128xf32>
    tpu.vector_store %arg6[%c0_12, %c0_13], %14 {strides = array<i32>} : memref<16x128xf32, #tpu.memory_space<vmem>>, vector<16x128xf32>,
    return
  }
  func.func @transform_0(%arg0: i32) -> (i32, i32) {
    %c0_i32 = arith.constant 0 : i32
    %c0_i32_0 = arith.constant 0 : i32
    return %arg0, %c0_i32 : i32, i32
  }
  func.func @transform_1(%arg0: i32) -> (i32, i32) {
    %c0_i32 = arith.constant 0 : i32
    %c0_i32_0 = arith.constant 0 : i32
    %c0_i32_1 = arith.constant 0 : i32
    return %c0_i32, %c0_i32_0 : i32, i32
  }
  func.func @transform_2(%arg0: i32) -> (i32, i32) {
    %c0_i32 = arith.constant 0 : i32
    %c0_i32_0 = arith.constant 0 : i32
    %c0_i32_1 = arith.constant 0 : i32
    return %c0_i32, %c0_i32_0 : i32, i32
  }
  func.func @transform_3(%arg0: i32) -> (i32, i32) {
    %c0_i32 = arith.constant 0 : i32
    %c0_i32_0 = arith.constant 0 : i32
    %c0_i32_1 = arith.constant 0 : i32
    return %c0_i32, %c0_i32_0 : i32, i32
  }
  func.func @transform_4(%arg0: i32) -> (i32, i32) {
    %c0_i32 = arith.constant 0 : i32
    %c0_i32_0 = arith.constant 0 : i32
    %c0_i32_1 = arith.constant 0 : i32
    return %c0_i32, %c0_i32_0 : i32, i32
  }
  func.func @transform_5(%arg0: i32) -> (i32, i32) {
    %c0_i32 = arith.constant 0 : i32
    %c0_i32_0 = arith.constant 0 : i32
    return %arg0, %c0_i32 : i32, i32
  }
}

module attributes {stable_mosaic.version = 11 : i64} {
  func.func @_ae_layer_kernel(%arg0: i32, %arg1: memref<16x128xf32, #tpu.memory_space<vmem>>, %arg2: memref<128x128xf32, #tpu.memory_space<vmem>>, %arg3: memref<1x128xf32, #tpu.memory_space<vmem>>, %arg4: memref<128x128xf32, #tpu.memory_space<vmem>>, %arg5: memref<1x128xf32, #tpu.memory_space<vmem>>, %arg6: memref<16x128xf32, #tpu.memory_space<vmem>>) attributes {dimension_semantics = [#tpu.dimension_semantics<parallel>], iteration_bounds = array<i64: 1>, scalar_prefetch = 0 : i64, scratch_operands = 0 : i64, tpu.core_type = #tpu.core_type<tc>, window_params = [{transform_indices = @transform_0, window_bounds = array<i64: 16, 128>}, {pipeline_mode = #tpu.pipeline_mode<synchronous>, transform_indices = @transform_1, window_bounds = array<i64: 128, 128>}, {pipeline_mode = #tpu.pipeline_mode<synchronous>, transform_indices = @transform_2, window_bounds = array<i64: 1, 128>}, {pipeline_mode = #tpu.pipeline_mode<synchronous>, transform_indices = @transform_3, window_bounds = array<i64: 128, 128>}, {pipeline_mode = #tpu.pipeline_mode<synchronous>, transform_indices = @transform_4, window_bounds = array<i64: 1, 128>}, {transform_indices = @transform_5, window_bounds = array<i64: 16, 128>}]} {
    %c0 = arith.constant 0 : index
    %c0_0 = arith.constant 0 : index
    %0 = vector.load %arg1[%c0, %c0_0] : memref<16x128xf32, #tpu.memory_space<vmem>>, vector<16x128xf32>
    %c0_1 = arith.constant 0 : index
    %c0_2 = arith.constant 0 : index
    %1 = vector.load %arg2[%c0_1, %c0_2] : memref<128x128xf32, #tpu.memory_space<vmem>>, vector<128x128xf32>
    %cst = arith.constant dense<0.000000e+00> : vector<16x128xf32>
    %2 = tpu.matmul %0, %1, %cst {dimension_numbers = #tpu.dot_dimension_numbers<[1], [0], [0], [1], [0, 0, 1, 1], [], []>} : vector<16x128xf32>, vector<128x128xf32>, vector<16x128xf32> -> vector<16x128xf32>
    %c0_3 = arith.constant 0 : index
    %c0_4 = arith.constant 0 : index
    %3 = vector.load %arg3[%c0_3, %c0_4] : memref<1x128xf32, #tpu.memory_space<vmem>>, vector<1x128xf32>
    %4 = vector.broadcast %3 : vector<1x128xf32> to vector<16x128xf32>
    %5 = arith.addf %2, %4 : vector<16x128xf32>
    %cst_5 = arith.constant 0.000000e+00 : f32
    %6 = vector.broadcast %cst_5 : f32 to vector<16x128xf32>
    %7 = arith.maximumf %5, %6 : vector<16x128xf32>
    %c0_6 = arith.constant 0 : index
    %c0_7 = arith.constant 0 : index
    %8 = vector.load %arg4[%c0_6, %c0_7] : memref<128x128xf32, #tpu.memory_space<vmem>>, vector<128x128xf32>
    %cst_8 = arith.constant dense<0.000000e+00> : vector<16x128xf32>
    %9 = tpu.matmul %7, %8, %cst_8 {dimension_numbers = #tpu.dot_dimension_numbers<[1], [0], [0], [1], [0, 0, 1, 1], [], []>} : vector<16x128xf32>, vector<128x128xf32>, vector<16x128xf32> -> vector<16x128xf32>
    %c0_9 = arith.constant 0 : index
    %c0_10 = arith.constant 0 : index
    %10 = vector.load %arg5[%c0_9, %c0_10] : memref<1x128xf32, #tpu.memory_space<vmem>>, vector<1x128xf32>
    %11 = vector.broadcast %10 : vector<1x128xf32> to vector<16x128xf32>
    %12 = arith.addf %9, %11 : vector<16x128xf32>
    %cst_11 = arith.constant 0.000000e+00 : f32
    %13 = vector.broadcast %cst_11 : f32 to vector<16x128xf32>
    %14 = arith.maximumf %12, %13 : vector<16x128xf32>
    %c0_12 = arith.constant 0 : index
    %c0_13 = arith.constant 0 : index
    %15 = vector.load %arg6[%c0_12, %c0_13] : memref<16x128xf32, #tpu.memory_space<vmem>>, vector<16x128xf32>
    tpu.vector_store %arg6[%c0_12, %c0_13], %14 {strides = array<i32>} : memref<16x128xf32, #tpu.memory_space<vmem>>, vector<16x128xf32>,
    return
  }
  func.func @transform_0(%arg0: i32) -> (i32, i32) {
    %c0_i32 = arith.constant 0 : i32
    %c0_i32_0 = arith.constant 0 : i32
    return %arg0, %c0_i32 : i32, i32
  }
  func.func @transform_1(%arg0: i32) -> (i32, i32) {
    %c0_i32 = arith.constant 0 : i32
    %c0_i32_0 = arith.constant 0 : i32
    %c0_i32_1 = arith.constant 0 : i32
    return %c0_i32, %c0_i32_0 : i32, i32
  }
  func.func @transform_2(%arg0: i32) -> (i32, i32) {
    %c0_i32 = arith.constant 0 : i32
    %c0_i32_0 = arith.constant 0 : i32
    %c0_i32_1 = arith.constant 0 : i32
    return %c0_i32, %c0_i32_0 : i32, i32
  }
  func.func @transform_3(%arg0: i32) -> (i32, i32) {
    %c0_i32 = arith.constant 0 : i32
    %c0_i32_0 = arith.constant 0 : i32
    %c0_i32_1 = arith.constant 0 : i32
    return %c0_i32, %c0_i32_0 : i32, i32
  }
  func.func @transform_4(%arg0: i32) -> (i32, i32) {
    %c0_i32 = arith.constant 0 : i32
    %c0_i32_0 = arith.constant 0 : i32
    %c0_i32_1 = arith.constant 0 : i32
    return %c0_i32, %c0_i32_0 : i32, i32
  }
  func.func @transform_5(%arg0: i32) -> (i32, i32) {
    %c0_i32 = arith.constant 0 : i32
    %c0_i32_0 = arith.constant 0 : i32
    return %arg0, %c0_i32 : i32, i32
  }
}

</mosaic_0001>

<bundles_post_ra>
// kernel: tpu_custom_call.1
= control target key start
LH: loop header
LB: loop body
LE: loop exit
PB: predicated region body
PF: predicated region fallthrough
CT: control target
= control target key end

     0   :  { %10 = vsyncpa [#allocation3], 0  ;;  %s757_s0 = inlined_call_operand.hbm [shape: f32[16,128], index: 0, kind: input, shape index: {}]   ;;  %s758_s1 = inlined_call_operand.hbm [shape: f32[128,128], index: 1, kind: input, shape index: {}]   ;;  %s759_s2 = inlined_call_operand.hbm [shape: f32[1,128], index: 2, kind: input, shape index: {}]   ;;  %s760_s3 = inlined_call_operand.hbm [shape: f32[128,128], index: 3, kind: input, shape index: {}]   ;;  %s761_s4 = inlined_call_operand.hbm [shape: f32[1,128], index: 4, kind: input, shape index: {}]   ;;  %s762_s5 = inlined_call_operand.hbm [shape: f32[16,128], index: 5, kind: output, shape index: {}]  }
   0x1   :  { %11 = vsyncpa [#allocation6], 0 }
   0x2   :  { %12 = vsyncpa [#allocation9], 0 }
   0x3   :  { %13 = vsyncpa [#allocation4], 0  ;;  %s628_s18 = smov [#allocation5]   ;;  %s629_s20 = smov [#allocation8]  }
   0x4   :  { %s31_s19 = sshll.u32 %s628_s18, 4  ;;  %s53_s21 = sshll.u32 %s629_s20, 4  ;;  %s32_s19 = int_to_ptr.vmem [resolvable:$true] %s31_s19  ;;  %s666_s21 = int_to_ptr.vmem [resolvable:$true] %s53_s21 }
   0x5   :  { %s488_s24 = scalar_lea.hbm %s758_s1, 2048 }
   0x6   :  { %p489_p0 = scmp.ne.s32.totalorder %s758_s1, %s488_s24  ;;  %p492_p1 = scmp.lt.u32.totalorder %s488_s24, %s758_s1 }
   0x8   :  { %p494_p2 = pnand %p492_p1, %p489_p0 }
   0xa   :  { %497 = shalt.err (!%p494_p2)
}
   0xb   :  { %s498_s29 = scalar_lea.vmem %s32_s19, 2048  ;;  %p503_p4 = scmp.lt.s32.totalorder %s32_s19, %s32_s19 }
   0xc   :  { %p499_p3 = scmp.ne.s32.totalorder %s32_s19, %s498_s29  ;;  %p504_p5 = scmp.lt.s32.totalorder %s498_s29, %s498_s29 }
   0xe   :  { %p505_p6 = por %p504_p5, %p503_p4 }
  0x10   :  { %p506_p7 = pnand %p505_p6, %p499_p3 }
  0x12   :  { %509 = shalt.err (!%p506_p7)
}
  0x13   :  { %s630_s30 = smov 128   ;;  %s631_s6 = smov 8  }
  0x14   :  { %37 = dma.hbm_to_vmem [thread:$0]  %s758_s1, 2048, %s32_s19, [#allocation6], %s630_s30, %s630_s30, %s631_s6  }
  0x15   :  { %s510_s11 = scalar_lea.hbm %s760_s3, 2048 }
  0x16   :  { %p511_p8 = scmp.ne.s32.totalorder %s760_s3, %s510_s11  ;;  %p514_p9 = scmp.lt.u32.totalorder %s510_s11, %s760_s3 }
  0x18   :  { %p516_p10 = pnand %p514_p9, %p511_p8 }
  0x1a   :  { %519 = shalt.err (!%p516_p10)
}
  0x1b   :  { %s520_s16 = scalar_lea.vmem %s666_s21, 2048  ;;  %p525_p12 = scmp.lt.s32.totalorder %s666_s21, %s666_s21 }
  0x1c   :  { %p521_p11 = scmp.ne.s32.totalorder %s666_s21, %s520_s16  ;;  %p526_p13 = scmp.lt.s32.totalorder %s520_s16, %s520_s16 }
  0x1e   :  { %p527_p0 = por %p526_p13, %p525_p12 }
  0x20   :  { %p528_p1 = pnand %p527_p0, %p521_p11 }
  0x22   :  { %531 = shalt.err (!%p528_p1)
}
  0x23   :  { %59 = dma.hbm_to_vmem [thread:$0]  %s760_s3, 2048, %s666_s21, [#allocation9], %s630_s30, %s630_s30, %s631_s6  }
  0x24   :  { %s632_s18 = smov [#allocation2]   ;;  %s633_s20 = smov [#allocation7]  }
  0x25   :  { %s19_s19 = sshll.u32 %s632_s18, 4  ;;  %s44_s22 = sshll.u32 %s633_s20, 4  ;;  %s20_s19 = int_to_ptr.vmem [resolvable:$true] %s19_s19  ;;  %s45_s22 = int_to_ptr.vmem [resolvable:$true] %s44_s22 }
  0x26   :  { %s532_s25 = scalar_lea.hbm %s757_s0, 256 }
  0x27   :  { %p533_p2 = scmp.ne.s32.totalorder %s757_s0, %s532_s25  ;;  %p536_p3 = scmp.lt.u32.totalorder %s532_s25, %s757_s0 }
  0x29   :  { %p538_p4 = pnand %p536_p3, %p533_p2 }
  0x2b   :  { %541 = shalt.err (!%p538_p4)
}
  0x2c   :  { %s542_s3 = scalar_lea.vmem %s20_s19, 256  ;;  %p547_p6 = scmp.lt.s32.totalorder %s20_s19, %s20_s19 }
  0x2d   :  { %p543_p5 = scmp.ne.s32.totalorder %s20_s19, %s542_s3  ;;  %p548_p7 = scmp.lt.s32.totalorder %s542_s3, %s542_s3 }
  0x2f   :  { %p549_p8 = por %p548_p7, %p547_p6 }
  0x31   :  { %p550_p9 = pnand %p549_p8, %p543_p5 }
  0x33   :  { %553 = shalt.err (!%p550_p9)
}
  0x34   :  { %25 = dma.hbm_to_vmem [thread:$0]  %s757_s0, 256, %s20_s19, [#allocation3], %s630_s30, %s630_s30, %s631_s6  }
  0x35   :  { %s554_s10 = scalar_lea.hbm %s759_s2, 16 }
  0x36   :  { %p555_p10 = scmp.ne.s32.totalorder %s759_s2, %s554_s10  ;;  %p558_p11 = scmp.lt.u32.totalorder %s554_s10, %s759_s2 }
  0x38   :  { %p560_p12 = pnand %p558_p11, %p555_p10 }
  0x3a   :  { %563 = shalt.err (!%p560_p12)
}
  0x3b   :  { %s564_s15 = scalar_lea.vmem %s45_s22, 16  ;;  %s568_s16 = scalar_lea.vmem %s45_s22, 32 }
  0x3c   :  { %p565_p13 = scmp.ne.s32.totalorder %s45_s22, %s564_s15  ;;  %p569_p0 = scmp.lt.s32.totalorder %s45_s22, %s45_s22 }
  0x3d   :  { %p570_p1 = scmp.lt.s32.totalorder %s568_s16, %s564_s15 }
  0x3f   :  { %p571_p2 = por %p570_p1, %p569_p0 }
  0x41   :  { %p572_p3 = pnand %p571_p2, %p565_p13 }
  0x43   :  { %575 = shalt.err (!%p572_p3)
}
  0x44   :  { %47 = dma.hbm_to_vmem [thread:$0]  %s759_s2, 16, %s45_s22, [#allocation6]  }
  0x45   :  { %s634_s17 = smov [#allocation10]   ;;  %s576_s23 = scalar_lea.hbm %s761_s4, 16 }
  0x46   :  { %s66_s18 = sshll.u32 %s634_s17, 4  ;;  %p577_p4 = scmp.ne.s32.totalorder %s761_s4, %s576_s23  ;;  %s67_s18 = int_to_ptr.vmem [resolvable:$true] %s66_s18 }
  0x47   :  { %p580_p5 = scmp.lt.u32.totalorder %s576_s23, %s761_s4 }
  0x49   :  { %p582_p6 = pnand %p580_p5, %p577_p4 }
  0x4b   :  { %585 = shalt.err (!%p582_p6)
}
  0x4c   :  { %s586_s28 = scalar_lea.vmem %s67_s18, 16  ;;  %s590_s2 = scalar_lea.vmem %s67_s18, 32 }
  0x4d   :  { %p587_p7 = scmp.ne.s32.totalorder %s67_s18, %s586_s28  ;;  %p591_p8 = scmp.lt.s32.totalorder %s67_s18, %s67_s18 }
  0x4e   :  { %p592_p9 = scmp.lt.s32.totalorder %s590_s2, %s586_s28 }
  0x50   :  { %p593_p10 = por %p592_p9, %p591_p8 }
  0x52   :  { %p594_p11 = pnand %p593_p10, %p587_p7 }
  0x54   :  { %597 = shalt.err (!%p594_p11)
}
  0x55   :  { %69 = dma.hbm_to_vmem [thread:$0]  %s761_s4, 16, %s67_s18, [#allocation9]  }
  0x56   :  { %620 = dma.done.wait [#allocation3], 256  }
  0x57   :  { %621 = vsyncadd [#allocation3], 4294967040 }
  0x58   :  { %622 = dma.done.wait [#allocation6], 2064  }
  0x59   :  { %623 = vsyncadd [#allocation6], 4294965232 }
  0x5a   :  { %624 = dma.done.wait [#allocation9], 2064  }
  0x5b   :  { %625 = vsyncadd [#allocation9], 4294965232  ;;  %v87_v0 = vld [vmem:[#allocation5] sm:$0xff]  ;;  %v88_v1 = vld [vmem:[#allocation5 + $0x8] sm:$0xff]  ;;  %s635_s4 = smov [#allocation11]  }
  0x5c   :  { %v89_v2 = vld [vmem:[#allocation5 + $0x10] sm:$0xff]  ;;  %v416_v3 = vpack.c.bf16 %v88_v1, %v87_v0  ;;  %v90_v4 = vld [vmem:[#allocation5 + $0x18] sm:$0xff]  ;;  %v91_v6 = vld [vmem:[#allocation5 + $0x20] sm:$0xff]  ;;  %s294_s3 = sshll.u32 %s635_s4, 4  ;;  %s295_s3 = int_to_ptr.vmem [resolvable:$true] %s294_s3 }
  0x5d   :  { %v420_v5 = vpack.c.bf16 %v90_v4, %v89_v2  ;;  %v92_v7 = vld [vmem:[#allocation5 + $0x28] sm:$0xff]  ;;  %v93_v9 = vld [vmem:[#allocation5 + $0x30] sm:$0xff]  ;;  %v94_v10 = vld [vmem:[#allocation5 + $0x38] sm:$0xff]  ;;  %s598_s21 = scalar_lea.vmem %s295_s3, 256  ;;  %p603_p13 = scmp.lt.s32.totalorder %s295_s3, %s295_s3 }
  0x5e   :  { %417 = vmatprep.subr.bf16.mxu0 %v416_v3  ;;  %v424_v8 = vpack.c.bf16 %v92_v7, %v91_v6  ;;  %v85_v11 = vld [vmem:[#allocation2] sm:$0xff]  ;;  %v187_v12 = vld [vmem:[#allocation8] sm:$0xff]  ;;  %v190_v16 = vld [vmem:[#allocation8 + $0x18] sm:$0xff]  ;;  %v428_v20 = vpack.c.bf16 %v94_v10, %v93_v9  ;;  %p599_p12 = scmp.ne.s32.totalorder %s295_s3, %s598_s21  ;;  %p604_p0 = scmp.lt.s32.totalorder %s598_s21, %s598_s21 }
  0x5f   :  { %419 = vmatpush3.bf16.msra.mxu0 %v416_v3  ;;  %378 = vmatprep.mubr.f32.mxu0 %v85_v11  ;;  %v188_v13 = vld [vmem:[#allocation8 + $0x8] sm:$0xff]  ;;  %v189_v14 = vld [vmem:[#allocation8 + $0x10] sm:$0xff]  ;;  %v191_v18 = vld [vmem:[#allocation8 + $0x20] sm:$0xff] }
  0x60   :  { %421 = vmatprep.subr.bf16.mxu0 %v420_v5  ;;  %v448_v15 = vpack.c.bf16 %v188_v13, %v187_v12  ;;  %v452_v17 = vpack.c.bf16 %v190_v16, %v189_v14  ;;  %v192_v19 = vld [vmem:[#allocation8 + $0x28] sm:$0xff]  ;;  %v95_v21 = vld [vmem:[#allocation5 + $0x40] sm:$0xff]  ;;  %v193_v24 = vld [vmem:[#allocation8 + $0x30] sm:$0xff]  ;;  %p605_p1 = por %p604_p0, %p603_p13 }
  0x61   :  { %v96_v22 = vld [vmem:[#allocation5 + $0x48] sm:$0xff]  ;;  %v456_v23 = vpack.c.bf16 %v192_v19, %v191_v18  ;;  %v194_v25 = vld [vmem:[#allocation8 + $0x38] sm:$0xff]  ;;  %v97_v27 = vld [vmem:[#allocation5 + $0x50] sm:$0xff] }
  0x62   :  { %449 = vmatprep.subr.bf16.mxu1 %v448_v15  ;;  %v432_v26 = vpack.c.bf16 %v96_v22, %v95_v21  ;;  %v98_v28 = vld [vmem:[#allocation5 + $0x58] sm:$0xff]  ;;  %v460_v29 = vpack.c.bf16 %v194_v25, %v193_v24  ;;  %v195_v30 = vld [vmem:[#allocation8 + $0x40] sm:$0xff]  ;;  %v196_v31 = vld [vmem:[#allocation8 + $0x48] sm:$0xff]  ;;  %p606_p2 = pnand %p605_p1, %p599_p12 }
  0x63   :  { %423 = vmatpush3.bf16.msra.mxu0 %v420_v5  ;;  %451 = vmatpush3.bf16.msra.mxu1 %v448_v15  ;;  %v436_v32 = vpack.c.bf16 %v98_v28, %v97_v27  ;;  %v99_v33 = vld [vmem:[#allocation5 + $0x60] sm:$0xff]  ;;  %v100_v34 = vld [vmem:[#allocation5 + $0x68] sm:$0xff]  ;;  %v464_v35 = vpack.c.bf16 %v196_v31, %v195_v30  ;;  %v197_v36 = vld [vmem:[#allocation8 + $0x50] sm:$0xff] }
  0x64   :  { %425 = vmatprep.subr.bf16.mxu0 %v424_v8  ;;  %453 = vmatprep.subr.bf16.mxu1 %v452_v17  ;;  %v198_v37 = vld [vmem:[#allocation8 + $0x58] sm:$0xff]  ;;  %v440_v38 = vpack.c.bf16 %v100_v34, %v99_v33  ;;  %v101_v39 = vld [vmem:[#allocation5 + $0x70] sm:$0xff]  ;;  %v199_v42 = vld [vmem:[#allocation8 + $0x60] sm:$0xff] }
  0x65   :  { %v102_v40 = vld [vmem:[#allocation5 + $0x78] sm:$0xff]  ;;  %v468_v41 = vpack.c.bf16 %v198_v37, %v197_v36  ;;  %v200_v43 = vld [vmem:[#allocation8 + $0x68] sm:$0xff]  ;;  %v308_v50 = vld [vmem:[#allocation7] ss:$0 sm:$0xff] }
  0x66   :  { %v444_v44 = vpack.c.bf16 %v102_v40, %v101_v39  ;;  %v472_v45 = vpack.c.bf16 %v200_v43, %v199_v42  ;;  %v86_v46 = vld [vmem:[#allocation2 + $0x8] sm:$0xff]  ;;  %v309_v57 = vld [vmem:[#allocation10] ss:$0 sm:$0xff] }
  0x67   :  { %427 = vmatpush3.bf16.msra.mxu0 %v424_v8  ;;  %455 = vmatpush3.bf16.msra.mxu1 %v452_v17  ;;  %v201_v47 = vld [vmem:[#allocation8 + $0x70] sm:$0xff]  ;;  %v202_v48 = vld [vmem:[#allocation8 + $0x78] sm:$0xff] }
  0x68   :  { %429 = vmatprep.subr.bf16.mxu0 %v428_v20  ;;  %457 = vmatprep.subr.bf16.mxu1 %v456_v23  ;;  %v476_v49 = vpack.c.bf16 %v202_v48, %v201_v47 }
  0x6b   :  { %431 = vmatpush3.bf16.msra.mxu0 %v428_v20  ;;  %459 = vmatpush3.bf16.msra.mxu1 %v456_v23 }
  0x6c   :  { %433 = vmatprep.subr.bf16.mxu0 %v432_v26  ;;  %461 = vmatprep.subr.bf16.mxu1 %v460_v29 }
  0x6f   :  { %435 = vmatpush3.bf16.msra.mxu0 %v432_v26  ;;  %463 = vmatpush3.bf16.msra.mxu1 %v460_v29 }
  0x70   :  { %437 = vmatprep.subr.bf16.mxu0 %v436_v32  ;;  %465 = vmatprep.subr.bf16.mxu1 %v464_v35 }
  0x73   :  { %439 = vmatpush3.bf16.msra.mxu0 %v436_v32  ;;  %467 = vmatpush3.bf16.msra.mxu1 %v464_v35 }
  0x74   :  { %441 = vmatprep.subr.bf16.mxu0 %v440_v38  ;;  %469 = vmatprep.subr.bf16.mxu1 %v468_v41 }
  0x77   :  { %443 = vmatpush3.bf16.msra.mxu0 %v440_v38  ;;  %471 = vmatpush3.bf16.msra.mxu1 %v468_v41 }
  0x78   :  { %445 = vmatprep.subr.bf16.mxu0 %v444_v44  ;;  %473 = vmatprep.subr.bf16.mxu1 %v472_v45 }
  0x7b   :  { %447 = vmatpush3.bf16.msra.mxu0 %v444_v44  ;;  %475 = vmatpush3.bf16.msra.mxu1 %v472_v45 }
  0x7c   :  { %477 = vmatprep.subr.bf16.mxu1 %v476_v49 }
  0x7e   :  { %379 = vmatmul.mubr.f32.vlgmr.msra.gmra.mrb[0].mxu0 %v86_v46 }
  0x7f   :  { %479 = vmatpush3.bf16.msra.mxu1 %v476_v49 }
 0x151   :  { %v380_v51 = vpop.f32.mrb[0].mxu0 }
 0x152   :  { %v182_v52 = vadd.f32 %v380_v51, %v308_v50  ;;  %v176_v53 = vpop.f32.mrb[1].mxu0 }
 0x153   :  { %v177_v54 = vadd.f32 %v308_v50, %v176_v53 }
 0x154   :  { %v186_v56 = vmax.f32 %v182_v52, 0.0 }
 0x155   :  { %v185_v55 = vmax.f32 %v177_v54, 0.0 }
 0x157   :  { %413 = vmatprep.mubr.f32.mxu1 %v185_v55 }
 0x158   :  { %414 = vmatmul.mubr.f32.vlgmr.msra.gmra.mrb[0].mxu1 %v186_v56 }
 0x22b   :  { %v415_v58 = vpop.f32.mrb[0].mxu1 }
 0x22c   :  { %v282_v59 = vadd.f32 %v415_v58, %v309_v57  ;;  %v276_v60 = vpop.f32.mrb[1].mxu1 }
 0x22d   :  { %v277_v61 = vadd.f32 %v309_v57, %v276_v60 }
 0x22e   :  { %v286_v62 = vmax.f32 %v282_v59, 0.0 }
 0x22f   :  { %v285_v63 = vmax.f32 %v277_v61, 0.0 }
 0x230   :  { %288 = vst [vmem:[#allocation11 + $0x8] sm:$0xff] %v286_v62 }
 0x231   :  { %287 = vst [vmem:[#allocation11] sm:$0xff] %v285_v63 }
 0x232   :  { %609 = shalt.err (!%p606_p2)
}
 0x233   :  { %s610_s9 = scalar_lea.hbm %s762_s5, 256 }
 0x234   :  { %p611_p3 = scmp.ne.s32.totalorder %s762_s5, %s610_s9  ;;  %p614_p4 = scmp.lt.u32.totalorder %s610_s9, %s762_s5 }
 0x236   :  { %p616_p5 = pnand %p614_p4, %p611_p3 }
 0x238   :  { %619 = shalt.err (!%p616_p5)
}
 0x239   :  { %300 = dma.vmem_to_hbm [thread:$0]  %s295_s3, 256, %s762_s5, [#allocation4], %s630_s30, %s630_s30, %s631_s6  }
 0x23a   :  { %626 = dma.done.wait [#allocation4], 256  }
 0x23b   :  { %627 = vsyncadd [#allocation4], 4294967040 }
 0x23c   :  { %304 = vsyncpa [#allocation3], 1 }
 0x23d   :  { %305 = vsyncpa [#allocation6], 1 }
 0x23e   :  { %306 = vsyncpa [#allocation9], 1 }
 0x23f   :  { %307 = vsyncpa [#allocation4], 1 }

// kernel: tpu_custom_call.1
= control target key start
LH: loop header
LB: loop body
LE: loop exit
PB: predicated region body
PF: predicated region fallthrough
CT: control target
= control target key end

     0   :  { %10 = vsyncpa [#allocation3], 0  ;;  %s757_s0 = inlined_call_operand.hbm [shape: f32[16,128], index: 0, kind: input, shape index: {}]   ;;  %s758_s1 = inlined_call_operand.hbm [shape: f32[128,128], index: 1, kind: input, shape index: {}]   ;;  %s759_s2 = inlined_call_operand.hbm [shape: f32[1,128], index: 2, kind: input, shape index: {}]   ;;  %s760_s3 = inlined_call_operand.hbm [shape: f32[128,128], index: 3, kind: input, shape index: {}]   ;;  %s761_s4 = inlined_call_operand.hbm [shape: f32[1,128], index: 4, kind: input, shape index: {}]   ;;  %s762_s5 = inlined_call_operand.hbm [shape: f32[16,128], index: 5, kind: output, shape index: {}]  }
   0x1   :  { %11 = vsyncpa [#allocation6], 0 }
   0x2   :  { %12 = vsyncpa [#allocation9], 0 }
   0x3   :  { %13 = vsyncpa [#allocation4], 0  ;;  %s628_s18 = smov [#allocation5]   ;;  %s629_s20 = smov [#allocation8]  }
   0x4   :  { %s31_s19 = sshll.u32 %s628_s18, 4  ;;  %s53_s21 = sshll.u32 %s629_s20, 4  ;;  %s32_s19 = int_to_ptr.vmem [resolvable:$true] %s31_s19  ;;  %s666_s21 = int_to_ptr.vmem [resolvable:$true] %s53_s21 }
   0x5   :  { %s488_s24 = scalar_lea.hbm %s758_s1, 2048 }
   0x6   :  { %p489_p0 = scmp.ne.s32.totalorder %s758_s1, %s488_s24  ;;  %p492_p1 = scmp.lt.u32.totalorder %s488_s24, %s758_s1 }
   0x8   :  { %p494_p2 = pnand %p492_p1, %p489_p0 }
   0xa   :  { %497 = shalt.err (!%p494_p2)
}
   0xb   :  { %s498_s29 = scalar_lea.vmem %s32_s19, 2048  ;;  %p503_p4 = scmp.lt.s32.totalorder %s32_s19, %s32_s19 }
   0xc   :  { %p499_p3 = scmp.ne.s32.totalorder %s32_s19, %s498_s29  ;;  %p504_p5 = scmp.lt.s32.totalorder %s498_s29, %s498_s29 }
   0xe   :  { %p505_p6 = por %p504_p5, %p503_p4 }
  0x10   :  { %p506_p7 = pnand %p505_p6, %p499_p3 }
  0x12   :  { %509 = shalt.err (!%p506_p7)
}
  0x13   :  { %s630_s30 = smov 128   ;;  %s631_s6 = smov 8  }
  0x14   :  { %37 = dma.hbm_to_vmem [thread:$0]  %s758_s1, 2048, %s32_s19, [#allocation6], %s630_s30, %s630_s30, %s631_s6  }
  0x15   :  { %s510_s11 = scalar_lea.hbm %s760_s3, 2048 }
  0x16   :  { %p511_p8 = scmp.ne.s32.totalorder %s760_s3, %s510_s11  ;;  %p514_p9 = scmp.lt.u32.totalorder %s510_s11, %s760_s3 }
  0x18   :  { %p516_p10 = pnand %p514_p9, %p511_p8 }
  0x1a   :  { %519 = shalt.err (!%p516_p10)
}
  0x1b   :  { %s520_s16 = scalar_lea.vmem %s666_s21, 2048  ;;  %p525_p12 = scmp.lt.s32.totalorder %s666_s21, %s666_s21 }
  0x1c   :  { %p521_p11 = scmp.ne.s32.totalorder %s666_s21, %s520_s16  ;;  %p526_p13 = scmp.lt.s32.totalorder %s520_s16, %s520_s16 }
  0x1e   :  { %p527_p0 = por %p526_p13, %p525_p12 }
  0x20   :  { %p528_p1 = pnand %p527_p0, %p521_p11 }
  0x22   :  { %531 = shalt.err (!%p528_p1)
}
  0x23   :  { %59 = dma.hbm_to_vmem [thread:$0]  %s760_s3, 2048, %s666_s21, [#allocation9], %s630_s30, %s630_s30, %s631_s6  }
  0x24   :  { %s632_s18 = smov [#allocation2]   ;;  %s633_s20 = smov [#allocation7]  }
  0x25   :  { %s19_s19 = sshll.u32 %s632_s18, 4  ;;  %s44_s22 = sshll.u32 %s633_s20, 4  ;;  %s20_s19 = int_to_ptr.vmem [resolvable:$true] %s19_s19  ;;  %s45_s22 = int_to_ptr.vmem [resolvable:$true] %s44_s22 }
  0x26   :  { %s532_s25 = scalar_lea.hbm %s757_s0, 256 }
  0x27   :  { %p533_p2 = scmp.ne.s32.totalorder %s757_s0, %s532_s25  ;;  %p536_p3 = scmp.lt.u32.totalorder %s532_s25, %s757_s0 }
  0x29   :  { %p538_p4 = pnand %p536_p3, %p533_p2 }
  0x2b   :  { %541 = shalt.err (!%p538_p4)
}
  0x2c   :  { %s542_s3 = scalar_lea.vmem %s20_s19, 256  ;;  %p547_p6 = scmp.lt.s32.totalorder %s20_s19, %s20_s19 }
  0x2d   :  { %p543_p5 = scmp.ne.s32.totalorder %s20_s19, %s542_s3  ;;  %p548_p7 = scmp.lt.s32.totalorder %s542_s3, %s542_s3 }
  0x2f   :  { %p549_p8 = por %p548_p7, %p547_p6 }
  0x31   :  { %p550_p9 = pnand %p549_p8, %p543_p5 }
  0x33   :  { %553 = shalt.err (!%p550_p9)
}
  0x34   :  { %25 = dma.hbm_to_vmem [thread:$0]  %s757_s0, 256, %s20_s19, [#allocation3], %s630_s30, %s630_s30, %s631_s6  }
  0x35   :  { %s554_s10 = scalar_lea.hbm %s759_s2, 16 }
  0x36   :  { %p555_p10 = scmp.ne.s32.totalorder %s759_s2, %s554_s10  ;;  %p558_p11 = scmp.lt.u32.totalorder %s554_s10, %s759_s2 }
  0x38   :  { %p560_p12 = pnand %p558_p11, %p555_p10 }
  0x3a   :  { %563 = shalt.err (!%p560_p12)
}
  0x3b   :  { %s564_s15 = scalar_lea.vmem %s45_s22, 16  ;;  %s568_s16 = scalar_lea.vmem %s45_s22, 32 }
  0x3c   :  { %p565_p13 = scmp.ne.s32.totalorder %s45_s22, %s564_s15  ;;  %p569_p0 = scmp.lt.s32.totalorder %s45_s22, %s45_s22 }
  0x3d   :  { %p570_p1 = scmp.lt.s32.totalorder %s568_s16, %s564_s15 }
  0x3f   :  { %p571_p2 = por %p570_p1, %p569_p0 }
  0x41   :  { %p572_p3 = pnand %p571_p2, %p565_p13 }
  0x43   :  { %575 = shalt.err (!%p572_p3)
}
  0x44   :  { %47 = dma.hbm_to_vmem [thread:$0]  %s759_s2, 16, %s45_s22, [#allocation6]  }
  0x45   :  { %s634_s17 = smov [#allocation10]   ;;  %s576_s23 = scalar_lea.hbm %s761_s4, 16 }
  0x46   :  { %s66_s18 = sshll.u32 %s634_s17, 4  ;;  %p577_p4 = scmp.ne.s32.totalorder %s761_s4, %s576_s23  ;;  %s67_s18 = int_to_ptr.vmem [resolvable:$true] %s66_s18 }
  0x47   :  { %p580_p5 = scmp.lt.u32.totalorder %s576_s23, %s761_s4 }
  0x49   :  { %p582_p6 = pnand %p580_p5, %p577_p4 }
  0x4b   :  { %585 = shalt.err (!%p582_p6)
}
  0x4c   :  { %s586_s28 = scalar_lea.vmem %s67_s18, 16  ;;  %s590_s2 = scalar_lea.vmem %s67_s18, 32 }
  0x4d   :  { %p587_p7 = scmp.ne.s32.totalorder %s67_s18, %s586_s28  ;;  %p591_p8 = scmp.lt.s32.totalorder %s67_s18, %s67_s18 }
  0x4e   :  { %p592_p9 = scmp.lt.s32.totalorder %s590_s2, %s586_s28 }
  0x50   :  { %p593_p10 = por %p592_p9, %p591_p8 }
  0x52   :  { %p594_p11 = pnand %p593_p10, %p587_p7 }
  0x54   :  { %597 = shalt.err (!%p594_p11)
}
  0x55   :  { %69 = dma.hbm_to_vmem [thread:$0]  %s761_s4, 16, %s67_s18, [#allocation9]  }
  0x56   :  { %620 = dma.done.wait [#allocation3], 256  }
  0x57   :  { %621 = vsyncadd [#allocation3], 4294967040 }
  0x58   :  { %622 = dma.done.wait [#allocation6], 2064  }
  0x59   :  { %623 = vsyncadd [#allocation6], 4294965232 }
  0x5a   :  { %624 = dma.done.wait [#allocation9], 2064  }
  0x5b   :  { %625 = vsyncadd [#allocation9], 4294965232  ;;  %v87_v0 = vld [vmem:[#allocation5] sm:$0xff]  ;;  %v88_v1 = vld [vmem:[#allocation5 + $0x8] sm:$0xff]  ;;  %s635_s4 = smov [#allocation11]  }
  0x5c   :  { %v89_v2 = vld [vmem:[#allocation5 + $0x10] sm:$0xff]  ;;  %v416_v3 = vpack.c.bf16 %v88_v1, %v87_v0  ;;  %v90_v4 = vld [vmem:[#allocation5 + $0x18] sm:$0xff]  ;;  %v91_v6 = vld [vmem:[#allocation5 + $0x20] sm:$0xff]  ;;  %s294_s3 = sshll.u32 %s635_s4, 4  ;;  %s295_s3 = int_to_ptr.vmem [resolvable:$true] %s294_s3 }
  0x5d   :  { %v420_v5 = vpack.c.bf16 %v90_v4, %v89_v2  ;;  %v92_v7 = vld [vmem:[#allocation5 + $0x28] sm:$0xff]  ;;  %v93_v9 = vld [vmem:[#allocation5 + $0x30] sm:$0xff]  ;;  %v94_v10 = vld [vmem:[#allocation5 + $0x38] sm:$0xff]  ;;  %s598_s21 = scalar_lea.vmem %s295_s3, 256  ;;  %p603_p13 = scmp.lt.s32.totalorder %s295_s3, %s295_s3 }
  0x5e   :  { %417 = vmatprep.subr.bf16.mxu0 %v416_v3  ;;  %v424_v8 = vpack.c.bf16 %v92_v7, %v91_v6  ;;  %v85_v11 = vld [vmem:[#allocation2] sm:$0xff]  ;;  %v187_v12 = vld [vmem:[#allocation8] sm:$0xff]  ;;  %v190_v16 = vld [vmem:[#allocation8 + $0x18] sm:$0xff]  ;;  %v428_v20 = vpack.c.bf16 %v94_v10, %v93_v9  ;;  %p599_p12 = scmp.ne.s32.totalorder %s295_s3, %s598_s21  ;;  %p604_p0 = scmp.lt.s32.totalorder %s598_s21, %s598_s21 }
  0x5f   :  { %419 = vmatpush3.bf16.msra.mxu0 %v416_v3  ;;  %378 = vmatprep.mubr.f32.mxu0 %v85_v11  ;;  %v188_v13 = vld [vmem:[#allocation8 + $0x8] sm:$0xff]  ;;  %v189_v14 = vld [vmem:[#allocation8 + $0x10] sm:$0xff]  ;;  %v191_v18 = vld [vmem:[#allocation8 + $0x20] sm:$0xff] }
  0x60   :  { %421 = vmatprep.subr.bf16.mxu0 %v420_v5  ;;  %v448_v15 = vpack.c.bf16 %v188_v13, %v187_v12  ;;  %v452_v17 = vpack.c.bf16 %v190_v16, %v189_v14  ;;  %v192_v19 = vld [vmem:[#allocation8 + $0x28] sm:$0xff]  ;;  %v95_v21 = vld [vmem:[#allocation5 + $0x40] sm:$0xff]  ;;  %v193_v24 = vld [vmem:[#allocation8 + $0x30] sm:$0xff]  ;;  %p605_p1 = por %p604_p0, %p603_p13 }
  0x61   :  { %v96_v22 = vld [vmem:[#allocation5 + $0x48] sm:$0xff]  ;;  %v456_v23 = vpack.c.bf16 %v192_v19, %v191_v18  ;;  %v194_v25 = vld [vmem:[#allocation8 + $0x38] sm:$0xff]  ;;  %v97_v27 = vld [vmem:[#allocation5 + $0x50] sm:$0xff] }
  0x62   :  { %449 = vmatprep.subr.bf16.mxu1 %v448_v15  ;;  %v432_v26 = vpack.c.bf16 %v96_v22, %v95_v21  ;;  %v98_v28 = vld [vmem:[#allocation5 + $0x58] sm:$0xff]  ;;  %v460_v29 = vpack.c.bf16 %v194_v25, %v193_v24  ;;  %v195_v30 = vld [vmem:[#allocation8 + $0x40] sm:$0xff]  ;;  %v196_v31 = vld [vmem:[#allocation8 + $0x48] sm:$0xff]  ;;  %p606_p2 = pnand %p605_p1, %p599_p12 }
  0x63   :  { %423 = vmatpush3.bf16.msra.mxu0 %v420_v5  ;;  %451 = vmatpush3.bf16.msra.mxu1 %v448_v15  ;;  %v436_v32 = vpack.c.bf16 %v98_v28, %v97_v27  ;;  %v99_v33 = vld [vmem:[#allocation5 + $0x60] sm:$0xff]  ;;  %v100_v34 = vld [vmem:[#allocation5 + $0x68] sm:$0xff]  ;;  %v464_v35 = vpack.c.bf16 %v196_v31, %v195_v30  ;;  %v197_v36 = vld [vmem:[#allocation8 + $0x50] sm:$0xff] }
  0x64   :  { %425 = vmatprep.subr.bf16.mxu0 %v424_v8  ;;  %453 = vmatprep.subr.bf16.mxu1 %v452_v17  ;;  %v198_v37 = vld [vmem:[#allocation8 + $0x58] sm:$0xff]  ;;  %v440_v38 = vpack.c.bf16 %v100_v34, %v99_v33  ;;  %v101_v39 = vld [vmem:[#allocation5 + $0x70] sm:$0xff]  ;;  %v199_v42 = vld [vmem:[#allocation8 + $0x60] sm:$0xff] }
  0x65   :  { %v102_v40 = vld [vmem:[#allocation5 + $0x78] sm:$0xff]  ;;  %v468_v41 = vpack.c.bf16 %v198_v37, %v197_v36  ;;  %v200_v43 = vld [vmem:[#allocation8 + $0x68] sm:$0xff]  ;;  %v308_v50 = vld [vmem:[#allocation7] ss:$0 sm:$0xff] }
  0x66   :  { %v444_v44 = vpack.c.bf16 %v102_v40, %v101_v39  ;;  %v472_v45 = vpack.c.bf16 %v200_v43, %v199_v42  ;;  %v86_v46 = vld [vmem:[#allocation2 + $0x8] sm:$0xff]  ;;  %v309_v57 = vld [vmem:[#allocation10] ss:$0 sm:$0xff] }
  0x67   :  { %427 = vmatpush3.bf16.msra.mxu0 %v424_v8  ;;  %455 = vmatpush3.bf16.msra.mxu1 %v452_v17  ;;  %v201_v47 = vld [vmem:[#allocation8 + $0x70] sm:$0xff]  ;;  %v202_v48 = vld [vmem:[#allocation8 + $0x78] sm:$0xff] }
  0x68   :  { %429 = vmatprep.subr.bf16.mxu0 %v428_v20  ;;  %457 = vmatprep.subr.bf16.mxu1 %v456_v23  ;;  %v476_v49 = vpack.c.bf16 %v202_v48, %v201_v47 }
  0x6b   :  { %431 = vmatpush3.bf16.msra.mxu0 %v428_v20  ;;  %459 = vmatpush3.bf16.msra.mxu1 %v456_v23 }
  0x6c   :  { %433 = vmatprep.subr.bf16.mxu0 %v432_v26  ;;  %461 = vmatprep.subr.bf16.mxu1 %v460_v29 }
  0x6f   :  { %435 = vmatpush3.bf16.msra.mxu0 %v432_v26  ;;  %463 = vmatpush3.bf16.msra.mxu1 %v460_v29 }
  0x70   :  { %437 = vmatprep.subr.bf16.mxu0 %v436_v32  ;;  %465 = vmatprep.subr.bf16.mxu1 %v464_v35 }
  0x73   :  { %439 = vmatpush3.bf16.msra.mxu0 %v436_v32  ;;  %467 = vmatpush3.bf16.msra.mxu1 %v464_v35 }
  0x74   :  { %441 = vmatprep.subr.bf16.mxu0 %v440_v38  ;;  %469 = vmatprep.subr.bf16.mxu1 %v468_v41 }
  0x77   :  { %443 = vmatpush3.bf16.msra.mxu0 %v440_v38  ;;  %471 = vmatpush3.bf16.msra.mxu1 %v468_v41 }
  0x78   :  { %445 = vmatprep.subr.bf16.mxu0 %v444_v44  ;;  %473 = vmatprep.subr.bf16.mxu1 %v472_v45 }
  0x7b   :  { %447 = vmatpush3.bf16.msra.mxu0 %v444_v44  ;;  %475 = vmatpush3.bf16.msra.mxu1 %v472_v45 }
  0x7c   :  { %477 = vmatprep.subr.bf16.mxu1 %v476_v49 }
  0x7e   :  { %379 = vmatmul.mubr.f32.vlgmr.msra.gmra.mrb[0].mxu0 %v86_v46 }
  0x7f   :  { %479 = vmatpush3.bf16.msra.mxu1 %v476_v49 }
 0x151   :  { %v380_v51 = vpop.f32.mrb[0].mxu0 }
 0x152   :  { %v182_v52 = vadd.f32 %v380_v51, %v308_v50  ;;  %v176_v53 = vpop.f32.mrb[1].mxu0 }
 0x153   :  { %v177_v54 = vadd.f32 %v308_v50, %v176_v53 }
 0x154   :  { %v186_v56 = vmax.f32 %v182_v52, 0.0 }
 0x155   :  { %v185_v55 = vmax.f32 %v177_v54, 0.0 }
 0x157   :  { %413 = vmatprep.mubr.f32.mxu1 %v185_v55 }
 0x158   :  { %414 = vmatmul.mubr.f32.vlgmr.msra.gmra.mrb[0].mxu1 %v186_v56 }
 0x22b   :  { %v415_v58 = vpop.f32.mrb[0].mxu1 }
 0x22c   :  { %v282_v59 = vadd.f32 %v415_v58, %v309_v57  ;;  %v276_v60 = vpop.f32.mrb[1].mxu1 }
 0x22d   :  { %v277_v61 = vadd.f32 %v309_v57, %v276_v60 }
 0x22e   :  { %v286_v62 = vmax.f32 %v282_v59, 0.0 }
 0x22f   :  { %v285_v63 = vmax.f32 %v277_v61, 0.0 }
 0x230   :  { %288 = vst [vmem:[#allocation11 + $0x8] sm:$0xff] %v286_v62 }
 0x231   :  { %287 = vst [vmem:[#allocation11] sm:$0xff] %v285_v63 }
 0x232   :  { %609 = shalt.err (!%p606_p2)
}
 0x233   :  { %s610_s9 = scalar_lea.hbm %s762_s5, 256 }
 0x234   :  { %p611_p3 = scmp.ne.s32.totalorder %s762_s5, %s610_s9  ;;  %p614_p4 = scmp.lt.u32.totalorder %s610_s9, %s762_s5 }
 0x236   :  { %p616_p5 = pnand %p614_p4, %p611_p3 }
 0x238   :  { %619 = shalt.err (!%p616_p5)
}
 0x239   :  { %300 = dma.vmem_to_hbm [thread:$0]  %s295_s3, 256, %s762_s5, [#allocation4], %s630_s30, %s630_s30, %s631_s6  }
 0x23a   :  { %626 = dma.done.wait [#allocation4], 256  }
 0x23b   :  { %627 = vsyncadd [#allocation4], 4294967040 }
 0x23c   :  { %304 = vsyncpa [#allocation3], 1 }
 0x23d   :  { %305 = vsyncpa [#allocation6], 1 }
 0x23e   :  { %306 = vsyncpa [#allocation9], 1 }
 0x23f   :  { %307 = vsyncpa [#allocation4], 1 }

</bundles_post_ra>
